<compile_context>
chip_gen: v7x
topology: tpu7x:2x2x1
jax: 0.10.0
libtpu: 0.0.40
codegen_flags: <defaults>
</compile_context>

<pallas_src>
import functools
import math

import jax
import jax.numpy as jnp
from jax.experimental import pallas as pl
from jax.experimental.pallas import tpu as pltpu


_LANE_WIDTH = 512      # last dim of the reshaped slab (multiple of 128)
_MAX_TILE_ROWS = 512   # 512x512 f32 tile = 1 MiB per buffer


def _round_up(x, m):
    return (x + m - 1) // m * m


def _mix_seed(seed):
    # Pre-mix host-side so the kernel only does a vector XOR; keep it
    # non-negative so int32 values stay exact under int->uint conversion.
    return ((int(seed) & 0xFFFFFFFF) * 0x9E3779B9) & 0x7FFFFFFF


def _uniform_from_index(idx_i32, seed_i32):
    """Counter-based hash (lowbias32) of the global element index -> U[0,1).

    Pure integer/float vector ops (no pltpu.prng_*), so it lowers under Mosaic
    and in interpret mode, and is bit-identical between the two passes.
    """
    x = (idx_i32 ^ seed_i32).astype(jnp.uint32)
    x = x ^ (x >> 16)
    x = x * jnp.uint32(0x7FEB352D)
    x = x ^ (x >> 15)
    x = x * jnp.uint32(0x846CA68B)
    x = x ^ (x >> 16)
    r24 = (x >> 8).astype(jnp.int32)              # top 24 bits, non-negative
    return r24.astype(jnp.float32) * jnp.float32(1.0 / (1 << 24))


def _bernoulli_masked(s_f32, tile_idx, seed_i32, *, p, tile_rows, width):
    """Returns (masked, idx) with masked = s*mask + (1-mask), mask~Bernoulli(p)."""
    r = jax.lax.broadcasted_iota(jnp.int32, s_f32.shape, 0) + tile_idx * tile_rows
    c = jax.lax.broadcasted_iota(jnp.int32, s_f32.shape, 1)
    idx = r * width + c                           # global flat element index
    u = _uniform_from_index(idx, seed_i32)
    mask = (u < jnp.float32(p)).astype(jnp.float32)
    masked = s_f32 * mask + (1.0 - mask)
    return masked, idx


def _masked_sum_kernel(seed_ref, s_ref, sum_ref, *, p, n_valid, tile_rows, width):
    t = pl.program_id(0)

    @pl.when(t == 0)
    def _init():
        sum_ref[...] = jnp.zeros_like(sum_ref)

    s = s_ref[...].astype(jnp.float32)
    masked, idx = _bernoulli_masked(s, t, seed_ref[0], p=p,
                                    tile_rows=tile_rows, width=width)
    valid = (idx < n_valid).astype(jnp.float32)   # ignore padded elements
    sum_ref[...] += jnp.sum(masked * valid, keepdims=True)


def _scale_kernel(seed_ref, scale_ref, s_ref, o_ref, *, p, tile_rows, width):
    t = pl.program_id(0)
    s = s_ref[...].astype(jnp.float32)
    masked, _ = _bernoulli_masked(s, t, seed_ref[0], p=p,
                                  tile_rows=tile_rows, width=width)
    # scale_ref is (1, 1) = numel / total, computed once outside the tile loop.
    o_ref[...] = (s * masked * scale_ref[...]).astype(o_ref.dtype)


def attention_drop1d(s, drop_prob, seed, training=True, *,
                     lane_width=_LANE_WIDTH, max_tile_rows=_MAX_TILE_ROWS):
    """Pallas implementation of AttentionDrop1d.forward.  s: (B, C, L)."""
    if (not training) or float(drop_prob) <= 0.0:
        return s

    orig_shape = s.shape
    orig_dtype = s.dtype
    n = int(math.prod(orig_shape))

    # Lane-dense (rows, lane_width) slab; rows is a multiple of the tile rows.
    width = lane_width
    rows = _round_up(pl.cdiv(n, width), 8)
    tile_rows = min(max_tile_rows, rows)
    rows = _round_up(rows, tile_rows)
    num_tiles = rows // tile_rows

    s_flat = s.reshape(-1)
    pad = rows * width - n
    if pad:
        s_flat = jnp.pad(s_flat, (0, pad))
    s2 = s_flat.reshape(rows, width)

    seed_arr = jnp.asarray([_mix_seed(seed)], dtype=jnp.int32)
    p = float(drop_prob)

    # ---- Pass 1: global sum of the masked tensor (over real elements only).
    total = pl.pallas_call(
        functools.partial(_masked_sum_kernel, p=p, n_valid=n,
                          tile_rows=tile_rows, width=width),
        out_shape=jax.ShapeDtypeStruct((1, 1), jnp.float32),
        grid_spec=pltpu.PrefetchScalarGridSpec(
            num_scalar_prefetch=1,                    # seed lives in SMEM
            grid=(num_tiles,),
            in_specs=[pl.BlockSpec((tile_rows, width),
                                   lambda t, seed_ref: (t, 0))],
            out_specs=pl.BlockSpec((1, 1), lambda t, seed_ref: (0, 0)),
        ),
        compiler_params=pltpu.CompilerParams(
            dimension_semantics=("arbitrary",)),      # resident accumulator
    )(seed_arr, s2)

    # Scalar scale factor numel/total, computed once (no per-tile rebroadcast).
    # NOTE: as in the PyTorch reference, no guard against total ~ 0.
    scale = jnp.float32(n) / total                    # (1, 1) float32

    # ---- Pass 2: regenerate the identical mask and write s * masked * scale.
    out2 = pl.pallas_call(
        functools.partial(_scale_kernel, p=p,
                          tile_rows=tile_rows, width=width),
        out_shape=jax.ShapeDtypeStruct((rows, width), orig_dtype),
        grid_spec=pltpu.PrefetchScalarGridSpec(
            num_scalar_prefetch=1,
            grid=(num_tiles,),
            in_specs=[pl.BlockSpec((1, 1), lambda t, seed_ref: (0, 0)),
                      pl.BlockSpec((tile_rows, width),
                                   lambda t, seed_ref: (t, 0))],
            out_specs=pl.BlockSpec((tile_rows, width),
                                   lambda t, seed_ref: (t, 0)),
        ),
        compiler_params=pltpu.CompilerParams(
            dimension_semantics=("parallel",)),       # megacore-friendly
    )(seed_arr, scale, s2)

    out_flat = out2.reshape(-1)
    if pad:
        out_flat = out_flat[:n]
    return out_flat.reshape(orig_shape)


def _host_reference(s, drop_prob, seed):
    """Pure-jnp reference using the same index-hash Bernoulli mask."""
    n = int(math.prod(s.shape))
    idx = jnp.arange(n, dtype=jnp.int32)
    u = _uniform_from_index(idx, jnp.int32(_mix_seed(seed)))
    mask = (u < jnp.float32(float(drop_prob))).astype(jnp.float32)
    sf = s.reshape(-1).astype(jnp.float32)
    masked = sf * mask + (1.0 - mask)
    out = sf * masked * (jnp.float32(n) / jnp.sum(masked))
    return out.reshape(s.shape).astype(s.dtype)


if __name__ == "__main__":
    key = jax.random.PRNGKey(0)
    B, C, L = 2, 4, 16                       # small NCL attention tensor
    s = jax.random.normal(key, (B, C, L), dtype=jnp.float32)

    drop_prob = 0.5
    seed = 1234

    y_train = jax.block_until_ready(attention_drop1d(s, drop_prob, seed, training=True))
    y_eval = jax.block_until_ready(attention_drop1d(s, drop_prob, seed, training=False))

    assert y_train.shape == s.shape and y_train.dtype == s.dtype
    assert bool(jnp.all(jnp.isfinite(y_train)))
    assert bool(jnp.all(y_eval == s))        # eval path is identity

    y_ref = _host_reference(s, drop_prob, seed)
    assert bool(jnp.allclose(y_train, y_ref, rtol=1e-3, atol=1e-3))

    # Exercise the multi-tile (accumulator) path with small tiles.
    key2 = jax.random.PRNGKey(0)
    s_big = jax.random.normal(key2, (4, 8, 64), dtype=jnp.float32)   # 2048 elems
    y_big = jax.block_until_ready(
        attention_drop1d(s_big, drop_prob, seed, training=True,
                         lane_width=128, max_tile_rows=8))           # 2 tiles
    y_big_ref = _host_reference(s_big, drop_prob, seed)
    assert y_big.shape == s_big.shape
    assert bool(jnp.allclose(y_big, y_big_ref, rtol=1e-3, atol=1e-3))

    print("KERNEL_OK")
</pallas_src>

<mosaic_0001>
module attributes {stable_mosaic.version = 11 : i64} {
  func.func @_masked_sum_kernel(%arg0: i32, %arg1: memref<1xi32, #tpu.memory_space<smem>>, %arg2: memref<8x512xf32, #tpu.memory_space<vmem>>, %arg3: memref<1x1xf32, #tpu.memory_space<vmem>>) attributes {dimension_semantics = [#tpu.dimension_semantics<arbitrary>], iteration_bounds = array<i64: 1>, scalar_prefetch = 1 : i64, scratch_operands = 0 : i64, tpu.core_type = #tpu.core_type<tc>, window_params = [{transform_indices = @transform_0, window_bounds = array<i64: 8, 512>}, {pipeline_mode = #tpu.pipeline_mode<synchronous>, transform_indices = @transform_1, window_bounds = array<i64: 1, 1>}]} {
    %c0_i32 = arith.constant 0 : i32
    %0 = arith.cmpi eq, %arg0, %c0_i32 : i32
    %1 = arith.extui %0 : i1 to i32
    %c0_i32_0 = arith.constant 0 : i32
    %2 = arith.cmpi ne, %1, %c0_i32_0 : i32
    scf.if %2 {
      %cst_12 = arith.constant 0.000000e+00 : f32
      %54 = vector.broadcast %cst_12 : f32 to vector<1x1xf32>
      %c0_13 = arith.constant 0 : index
      %c0_14 = arith.constant 0 : index
      %55 = vector.load %arg3[%c0_13, %c0_14] : memref<1x1xf32, #tpu.memory_space<vmem>>, vector<1x1xf32>
      tpu.vector_store %arg3[%c0_13, %c0_14], %54 {strides = array<i32>} : memref<1x1xf32, #tpu.memory_space<vmem>>, vector<1x1xf32>,
    } else {
    }
    %c0 = arith.constant 0 : index
    %c0_1 = arith.constant 0 : index
    %3 = vector.load %arg2[%c0, %c0_1] : memref<8x512xf32, #tpu.memory_space<vmem>>, vector<8x512xf32>
    %c0_2 = arith.constant 0 : index
    %4 = memref.load %arg1[%c0_2] : memref<1xi32, #tpu.memory_space<smem>>
    %5 = tpu.iota {dimensions = array<i32: 0>} : vector<8x512xi32>
    %c8_i32 = arith.constant 8 : i32
    %6 = arith.muli %arg0, %c8_i32 : i32
    %7 = vector.broadcast %6 : i32 to vector<8x512xi32>
    %8 = arith.addi %5, %7 : vector<8x512xi32>
    %9 = tpu.iota {dimensions = array<i32: 1>} : vector<8x512xi32>
    %c512_i32 = arith.constant 512 : i32
    %10 = vector.broadcast %c512_i32 : i32 to vector<8x512xi32>
    %11 = arith.muli %8, %10 : vector<8x512xi32>
    %12 = arith.addi %11, %9 : vector<8x512xi32>
    %13 = vector.broadcast %4 : i32 to vector<8x512xi32>
    %14 = arith.xori %12, %13 : vector<8x512xi32>
    %c16_i32 = arith.constant 16 : i32
    %15 = vector.broadcast %c16_i32 : i32 to vector<8x512xi32>
    %16 = arith.shrui %14, %15 : vector<8x512xi32>
    %17 = arith.xori %14, %16 : vector<8x512xi32>
    %c2146121005_i32 = arith.constant 2146121005 : i32
    %18 = vector.broadcast %c2146121005_i32 : i32 to vector<8x512xi32>
    %19 = arith.muli %17, %18 : vector<8x512xi32>
    %c15_i32 = arith.constant 15 : i32
    %20 = vector.broadcast %c15_i32 : i32 to vector<8x512xi32>
    %21 = arith.shrui %19, %20 : vector<8x512xi32>
    %22 = arith.xori %19, %21 : vector<8x512xi32>
    %c-2073254261_i32 = arith.constant -2073254261 : i32
    %23 = vector.broadcast %c-2073254261_i32 : i32 to vector<8x512xi32>
    %24 = arith.muli %22, %23 : vector<8x512xi32>
    %c16_i32_3 = arith.constant 16 : i32
    %25 = vector.broadcast %c16_i32_3 : i32 to vector<8x512xi32>
    %26 = arith.shrui %24, %25 : vector<8x512xi32>
    %27 = arith.xori %24, %26 : vector<8x512xi32>
    %c8_i32_4 = arith.constant 8 : i32
    %28 = vector.broadcast %c8_i32_4 : i32 to vector<8x512xi32>
    %29 = arith.shrui %27, %28 : vector<8x512xi32>
    %30 = arith.sitofp %29 : vector<8x512xi32> to vector<8x512xf32>
    %cst = arith.constant 5.96046448E-8 : f32
    %31 = vector.broadcast %cst : f32 to vector<8x512xf32>
    %32 = arith.mulf %30, %31 : vector<8x512xf32>
    %cst_5 = arith.constant 5.000000e-01 : f32
    %33 = vector.broadcast %cst_5 : f32 to vector<8x512xf32>
    %34 = arith.cmpf olt, %32, %33 : vector<8x512xf32>
    %35 = arith.extui %34 : vector<8x512xi1> to vector<8x512xi32>
    %36 = arith.sitofp %35 : vector<8x512xi32> to vector<8x512xf32>
    %37 = arith.mulf %3, %36 : vector<8x512xf32>
    %cst_6 = arith.constant 1.000000e+00 : f32
    %38 = vector.broadcast %cst_6 : f32 to vector<8x512xf32>
    %39 = arith.subf %38, %36 : vector<8x512xf32>
    %40 = arith.addf %37, %39 : vector<8x512xf32>
    %c128_i32 = arith.constant 128 : i32
    %41 = vector.broadcast %c128_i32 : i32 to vector<8x512xi32>
    %42 = arith.cmpi slt, %12, %41 : vector<8x512xi32>
    %43 = arith.extui %42 : vector<8x512xi1> to vector<8x512xi32>
    %44 = arith.sitofp %43 : vector<8x512xi32> to vector<8x512xf32>
    %c0_7 = arith.constant 0 : index
    %c0_8 = arith.constant 0 : index
    %45 = vector.load %arg3[%c0_7, %c0_8] : memref<1x1xf32, #tpu.memory_space<vmem>>, vector<1x1xf32>
    %46 = arith.mulf %40, %44 : vector<8x512xf32>
    %47 = vector.shape_cast %46 : vector<8x512xf32> to vector<1x8x512xf32>
    %cst_9 = arith.constant dense<0.000000e+00> : vector<1xf32>
    %48 = vector.multi_reduction <add>, %47, %cst_9 [1, 2] : vector<1x8x512xf32> to vector<1xf32>
    %49 = vector.shape_cast %48 : vector<1xf32> to vector<1x1x1xf32>
    %50 = vector.extract %49[0, 0, 0] : f32 from vector<1x1x1xf32>
    %51 = vector.broadcast %50 : f32 to vector<1x1xf32>
    %52 = arith.addf %45, %51 : vector<1x1xf32>
    %c0_10 = arith.constant 0 : index
    %c0_11 = arith.constant 0 : index
    %53 = vector.load %arg3[%c0_10, %c0_11] : memref<1x1xf32, #tpu.memory_space<vmem>>, vector<1x1xf32>
    tpu.vector_store %arg3[%c0_10, %c0_11], %52 {strides = array<i32>} : memref<1x1xf32, #tpu.memory_space<vmem>>, vector<1x1xf32>,
    return
  }
  func.func @transform_0(%arg0: i32, %arg1: memref<1xi32, #tpu.memory_space<smem>>) -> (i32, i32) {
    %c0_i32 = arith.constant 0 : i32
    %c0_i32_0 = arith.constant 0 : i32
    return %arg0, %c0_i32 : i32, i32
  }
  func.func @transform_1(%arg0: i32, %arg1: memref<1xi32, #tpu.memory_space<smem>>) -> (i32, i32) {
    %c0_i32 = arith.constant 0 : i32
    %c0_i32_0 = arith.constant 0 : i32
    %c0_i32_1 = arith.constant 0 : i32
    return %c0_i32, %c0_i32_0 : i32, i32
  }
}

</mosaic_0001>

<bundles_post_ra>
// kernel: tpu_custom_call.1
= control target key start
LH: loop header
LB: loop body
LE: loop exit
PB: predicated region body
PF: predicated region fallthrough
CT: control target
= control target key end

     0   :  { %8 = vsyncpa [#allocation5], 0  ;;  %s311_s0 = inlined_call_operand.<no memory space> [shape: s32[1], index: 0, kind: input, shape index: {}]   ;;  %s312_s1 = inlined_call_operand.hbm [shape: f32[8,512], index: 1, kind: input, shape index: {}]   ;;  %s313_s2 = inlined_call_operand.hbm [shape: f32[1,1], index: 2, kind: output, shape index: {}]  }
   0x1   :  { %9 = vsyncpa [#allocation6], 0  ;;  %s231_s9 = smov [#allocation4]   ;;  %s183_s13 = scalar_lea.hbm %s312_s1, 512 }
   0x2   :  { %s16_s10 = sshll.u32 %s231_s9, 4  ;;  %p184_p0 = scmp.ne.s32.totalorder %s312_s1, %s183_s13  ;;  %s17_s10 = int_to_ptr.vmem [resolvable:$true] %s16_s10 }
   0x3   :  { %p187_p1 = scmp.lt.u32.totalorder %s183_s13, %s312_s1 }
   0x5   :  { %p189_p2 = pnand %p187_p1, %p184_p0 }
   0x7   :  { %192 = shalt.err (!%p189_p2)
}
   0x8   :  { %s193_s18 = scalar_lea.vmem %s17_s10, 512  ;;  %p198_p4 = scmp.lt.s32.totalorder %s17_s10, %s17_s10 }
   0x9   :  { %p194_p3 = scmp.ne.s32.totalorder %s17_s10, %s193_s18  ;;  %p199_p5 = scmp.lt.s32.totalorder %s193_s18, %s193_s18 }
   0xb   :  { %p200_p6 = por %p199_p5, %p198_p4 }
   0xd   :  { %p201_p7 = pnand %p200_p6, %p194_p3 }
   0xf   :  { %204 = shalt.err (!%p201_p7)
}
  0x10   :  { %19 = dma.hbm_to_vmem [thread:$0]  %s312_s1, 512, %s17_s10, [#allocation5]  }
  0x11   :  { %227 = dma.done.wait [#allocation5], 512  }
  0x12   :  { %228 = vsyncadd [#allocation5], 4294966784  ;;  %vm27_vm0 = vcmask 0   ;;  %v34_v0 = vlaneseq  ;;  %v232_v1 = vmov 0.0   ;;  %v49_v8 = vstv %s311_s0  ;;  %v29_v59 = vld [vmem:[#allocation4] sm:$0xff]  ;;  %v30_v60 = vld [vmem:[#allocation4 + $0x8] sm:$0xff] }
  0x13   :  { %28 = vst.msk [vmem:[#allocation7] sm:$0x1] %vm27_vm0, %v232_v1  ;;  %v31_v63 = vld [vmem:[#allocation4 + $0x10] sm:$0xff]  ;;  %s233_s0 = smov [#allocation7]  }
  0x14   :  { %v35_v2 = vshrl.u32 %v34_v0, 7  ;;  %v40_v3 = vand.u32 127, %v34_v0  ;;  %v32_v0 = vld [vmem:[#allocation4 + $0x18] sm:$0xff]  ;;  %s161_s1 = sshll.u32 %s233_s0, 4  ;;  %s162_s1 = int_to_ptr.vmem [resolvable:$true] %s161_s1 }
  0x15   :  { %s205_s24 = scalar_lea.vmem %s162_s1, 16  ;;  %s209_s25 = scalar_lea.vmem %s162_s1, 32 }
  0x16   :  { %v41_v4 = vadd.s32 128, %v40_v3  ;;  %v42_v5 = vadd.s32 256, %v40_v3  ;;  %v43_v6 = vadd.s32 384, %v40_v3  ;;  %v44_v7 = vmul.u32 512, %v35_v2  ;;  %p206_p8 = scmp.ne.s32.totalorder %s162_s1, %s205_s24  ;;  %p210_p9 = scmp.lt.s32.totalorder %s162_s1, %s162_s1 }
  0x17   :  { %p211_p10 = scmp.lt.s32.totalorder %s209_s25, %s205_s24 }
  0x18   :  { %v266_v9 = vadd.s32 %v44_v7, %v40_v3  ;;  %v268_v10 = vadd.s32 %v44_v7, %v41_v4  ;;  %v270_v11 = vadd.s32 %v44_v7, %v42_v5  ;;  %v272_v12 = vadd.s32 %v44_v7, %v43_v6 }
  0x19   :  { %p212_p11 = por %p211_p10, %p210_p9 }
  0x1a   :  { %v50_v13 = vxor.u32 %v49_v8, %v266_v9  ;;  %v51_v14 = vxor.u32 %v49_v8, %v268_v10  ;;  %v52_v15 = vxor.u32 %v49_v8, %v270_v11  ;;  %v53_v16 = vxor.u32 %v49_v8, %v272_v12 }
  0x1b   :  { %vm122_vm1 = vcmp.lt.s32.totalorder %v266_v9, 128  ;;  %vm123_vm2 = vcmp.lt.s32.totalorder %v268_v10, 128  ;;  %vm124_vm5 = vcmp.lt.s32.totalorder %v270_v11, 128  ;;  %vm125_vm6 = vcmp.lt.s32.totalorder %v272_v12, 128  ;;  %p213_p12 = pnand %p212_p11, %p206_p8 }
  0x1c   :  { %v54_v17 = vshrl.u32 %v50_v13, 16  ;;  %v55_v18 = vshrl.u32 %v51_v14, 16  ;;  %v56_v19 = vshrl.u32 %v52_v15, 16  ;;  %v57_v20 = vshrl.u32 %v53_v16, 16 }
  0x1e   :  { %v58_v21 = vxor.u32 %v54_v17, %v50_v13  ;;  %v59_v22 = vxor.u32 %v55_v18, %v51_v14  ;;  %v60_v23 = vxor.u32 %v56_v19, %v52_v15  ;;  %v61_v24 = vxor.u32 %v57_v20, %v53_v16 }
  0x1f   :  { %v174_v18 = vsel %vm122_vm1, 1.0, %v232_v1  ;;  %v175_v19 = vsel %vm123_vm2, 1.0, %v232_v1 }
  0x20   :  { %v62_v25 = vmul.u32 2146121005, %v58_v21  ;;  %v63_v26 = vmul.u32 2146121005, %v59_v22  ;;  %v176_v22 = vsel %vm124_vm5, 1.0, %v232_v1 }
  0x21   :  { %v64_v27 = vmul.u32 2146121005, %v60_v23  ;;  %v65_v28 = vmul.u32 2146121005, %v61_v24 }
  0x22   :  { %v66_v29 = vshrl.u32 %v62_v25, 15  ;;  %v67_v30 = vshrl.u32 %v63_v26, 15 }
  0x23   :  { %v68_v31 = vshrl.u32 %v64_v27, 15  ;;  %v69_v32 = vshrl.u32 %v65_v28, 15 }
  0x24   :  { %v70_v33 = vxor.u32 %v66_v29, %v62_v25  ;;  %v71_v34 = vxor.u32 %v67_v30, %v63_v26  ;;  %v177_v25 = vsel %vm125_vm6, 1.0, %v232_v1 }
  0x25   :  { %v72_v35 = vxor.u32 %v68_v31, %v64_v27  ;;  %v73_v36 = vxor.u32 %v69_v32, %v65_v28 }
  0x26   :  { %v74_v37 = vmul.u32 2221713035, %v70_v33  ;;  %v75_v38 = vmul.u32 2221713035, %v71_v34 }
  0x27   :  { %v76_v39 = vmul.u32 2221713035, %v72_v35  ;;  %v77_v40 = vmul.u32 2221713035, %v73_v36 }
  0x28   :  { %v78_v41 = vshrl.u32 %v74_v37, 16  ;;  %v79_v42 = vshrl.u32 %v75_v38, 16 }
  0x29   :  { %v80_v43 = vshrl.u32 %v76_v39, 16  ;;  %v81_v44 = vshrl.u32 %v77_v40, 16 }
  0x2a   :  { %v82_v45 = vxor.u32 %v78_v41, %v74_v37  ;;  %v83_v46 = vxor.u32 %v79_v42, %v75_v38  ;;  %v134_v37 = vld [vmem:[#allocation7] sm:$0x1] }
  0x2b   :  { %v84_v47 = vxor.u32 %v80_v43, %v76_v39  ;;  %v85_v48 = vxor.u32 %v81_v44, %v77_v40 }
  0x2c   :  { %v86_v49 = vshrl.u32 %v82_v45, 8  ;;  %v87_v50 = vshrl.u32 %v83_v46, 8 }
  0x2d   :  { %v88_v51 = vshrl.u32 %v84_v47, 8  ;;  %v89_v52 = vshrl.u32 %v85_v48, 8 }
  0x2e   :  { %v90_v53 = vcvt.s32.f32 %v86_v49  ;;  %v91_v54 = vcvt.s32.f32 %v87_v50 }
  0x2f   :  { %v92_v55 = vcvt.s32.f32 %v88_v51  ;;  %v93_v56 = vcvt.s32.f32 %v89_v52 }
  0x30   :  { %v94_v57 = vmul.f32 5.9604645e-08, %v90_v53  ;;  %v95_v58 = vmul.f32 5.9604645e-08, %v91_v54 }
  0x31   :  { %v96_v61 = vmul.f32 5.9604645e-08, %v92_v55  ;;  %v97_v62 = vmul.f32 5.9604645e-08, %v93_v56 }
  0x32   :  { %vm98_vm3 = vcmp.lt.f32.partialorder %v94_v57, 0.5  ;;  %vm99_vm4 = vcmp.lt.f32.partialorder %v95_v58, 0.5 }
  0x33   :  { %vm100_vm7 = vcmp.lt.f32.partialorder %v96_v61, 0.5  ;;  %vm101_vm8 = vcmp.lt.f32.partialorder %v97_v62, 0.5  ;;  %v170_v2 = vsel %vm98_vm3, 1.0, %v232_v1  ;;  %v171_v3 = vsel %vm99_vm4, 1.0, %v232_v1 }
  0x34   :  { %v172_v4 = vsel %vm100_vm7, 1.0, %v232_v1  ;;  %v173_v5 = vsel %vm101_vm8, 1.0, %v232_v1  ;;  %v110_v6 = vmul.f32 %v170_v2, %v29_v59  ;;  %v111_v7 = vmul.f32 %v171_v3, %v30_v60 }
  0x35   :  { %v112_v8 = vmul.f32 %v172_v4, %v31_v63  ;;  %v113_v13 = vmul.f32 %v173_v5, %v32_v0  ;;  %v114_v14 = vsub.f32 1.0, %v170_v2  ;;  %v115_v15 = vsub.f32 1.0, %v171_v3 }
  0x36   :  { %v116_v16 = vsub.f32 1.0, %v172_v4  ;;  %v117_v17 = vsub.f32 1.0, %v173_v5 }
  0x37   :  { %v118_v20 = vadd.f32 %v114_v14, %v110_v6  ;;  %v119_v21 = vadd.f32 %v115_v15, %v111_v7 }
  0x38   :  { %v120_v23 = vadd.f32 %v116_v16, %v112_v8  ;;  %v121_v24 = vadd.f32 %v117_v17, %v113_v13 }
  0x39   :  { %v135_v26 = vmul.f32 %v174_v18, %v118_v20  ;;  %v136_v27 = vmul.f32 %v175_v19, %v119_v21 }
  0x3a   :  { %v137_v9 = vmul.f32 %v176_v22, %v120_v23  ;;  %v138_v28 = vmul.f32 %v177_v25, %v121_v24 }
  0x3b   :  { %v139_v29 = vadd.f32 %v136_v27, %v135_v26 }
  0x3d   :  { %v140_v30 = vadd.f32 %v139_v29, %v137_v9 }
  0x3f   :  { %v141_v10 = vadd.f32 %v140_v30, %v138_v28 }
  0x41   :  { %142 = vadd.xlane.f32.xlu0 %v141_v10 }
  0xce   :  { %v143_v31 = vpop.xlane.xlu0 %142 }
  0xcf   :  { %v144_v32 = vrot.slane %v143_v31, 4 }
  0xd1   :  { %v145_v33 = vadd.f32 %v144_v32, %v143_v31 }
  0xd3   :  { %v146_v34 = vrot.slane %v145_v33, 2 }
  0xd5   :  { %v147_v11 = vadd.f32 %v146_v34, %v145_v33 }
  0xd7   :  { %v148_v35 = vrot.slane %v147_v11, 1 }
  0xd9   :  { %v149_v36 = vadd.f32 %v148_v35, %v147_v11 }
  0xdb   :  { %178 = vpush %v149_v36 }
 0x10c   :  { %s179_s23 = spop %178 }
 0x10d   :  { %v151_v1 = vstv %s179_s23 }
 0x10e   :  { %v152_v12 = vadd.f32 %v151_v1, %v134_v37 }
 0x110   :  { %154 = vst.msk [vmem:[#allocation7] sm:$0x1] %vm27_vm0, %v152_v12 }
 0x111   :  { %216 = shalt.err (!%p213_p12)
}
 0x112   :  { %s217_s28 = scalar_lea.hbm %s313_s2, 16 }
 0x113   :  { %p218_p13 = scmp.ne.s32.totalorder %s313_s2, %s217_s28  ;;  %p221_p0 = scmp.lt.u32.totalorder %s217_s28, %s313_s2 }
 0x115   :  { %p223_p1 = pnand %p221_p0, %p218_p13 }
 0x117   :  { %226 = shalt.err (!%p223_p1)
}
 0x118   :  { %164 = dma.vmem_to_hbm [thread:$0]  %s162_s1, 16, %s313_s2, [#allocation6]  }
 0x119   :  { %229 = dma.done.wait [#allocation6], 16  }
 0x11a   :  { %230 = vsyncadd [#allocation6], 4294967280 }
 0x11b   :  { %168 = vsyncpa [#allocation5], 1 }
 0x11c   :  { %169 = vsyncpa [#allocation6], 1 }

</bundles_post_ra>
